<compile_context>
chip_gen: v6e
topology: v6e:2x2x1
jax: 0.10.0
libtpu: 0.0.40
codegen_flags: <defaults>
</compile_context>

<pallas_src>
import functools

import jax
import jax.numpy as jnp
import numpy as np
from jax import lax
from jax.experimental import pallas as pl
from jax.experimental.pallas import tpu as pltpu


def _round_up(x, m):
    return (x + m - 1) // m * m


def _disc_kernel(
    x_ref,       # [T*Bp, D]   bf16  time-major inputs (batch padded to 8 sublanes)
    seqlen_ref,  # [Bp, 1]     i32   (padded rows have length 0)
    wrow_ref,    # [Bp, HP2]   f32   gathered bilinear rows W[0, attr[b], :] (padded)
    wih_ref,     # [D, HP2]    bf16  [W_ih_fwd | W_ih_bwd | 0-pad]
    bias_ref,    # [1, HP2]    f32   [b_fwd | b_bwd | 0-pad]  (b_ih + b_hh folded)
    whh_ref,     # [HP2, HP2]  bf16  block_diag(W_hh_fwd, W_hh_bwd), zeros elsewhere
    vw_ref,      # [1, HP2]    f32   [v_fwd | v_bwd | 0-pad]
    logits_ref,  # out [Bp, Bp] f32  logits[i, j] = l_W_phi[i] + v_phi[j]
    xp_ref,      # scratch VMEM [T*Bp, HP2] f32: per-step input projections
    *,
    hidden_size,
):
    Bp = seqlen_ref.shape[0]
    HP2 = whh_ref.shape[0]
    T = x_ref.shape[0] // Bp
    H = hidden_size

    # ---- Phase 1: one bf16 MXU matmul projects x for both directions (f32 acc,
    # bias folded); result lives in an aligned VMEM scratch, not a loop-carried
    # value (bounds live ranges / avoids vreg spills at larger T). ----
    xp_ref[...] = (
        jnp.dot(x_ref[...], wih_ref[...], preferred_element_type=jnp.float32)
        + bias_ref[...]
    )

    # Invariants hoisted out of the recurrence.
    seqlen = seqlen_ref[...]                                   # [Bp, 1] i32
    whh = whh_ref[...]                                         # [HP2, HP2] bf16
    lane = lax.broadcasted_iota(jnp.int32, (1, HP2), 1)
    is_fwd = lane < H          # lanes [0,H) hold the fwd state, [H,2H) the bwd state

    # ---- Phase 2: fused fwd/bwd recurrence. Carried state is a single (8,128)
    # vreg; each step = ONE block-diagonal bf16 dot + ONE tanh + ONE select. ----
    def body(t, h):
        tb = T - 1 - t
        rf = pl.multiple_of(t * Bp, 8)
        rb = pl.multiple_of(tb * Bp, 8)
        xt = jnp.where(is_fwd, xp_ref[pl.ds(rf, Bp), :], xp_ref[pl.ds(rb, Bp), :])
        h_new = jnp.tanh(
            jnp.dot(h.astype(jnp.bfloat16), whh,
                    preferred_element_type=jnp.float32) + xt)
        # Packed-sequence semantics: fwd lanes update while t < len, bwd lanes
        # while (T-1-t) < len; padded batch rows (len == 0) never update.
        step_idx = jnp.where(is_fwd, t, tb)                    # [1, HP2] i32
        upd = step_idx < seqlen                                # [Bp, HP2] bool
        return jnp.where(upd, h_new, h)

    # T is tiny and static here; full unroll keeps LLO visibility.
    # TODO(synk): for large T switch to partial unroll (unroll=2-4).
    h = lax.fori_loop(0, T, body, jnp.zeros((Bp, HP2), jnp.float32), unroll=True)

    # ---- Phase 3: epilogue. Bilinear term = VPU multiply + lane reduction (the
    # one-hot @ W matmul was replaced by a wrapper-side row gather); the linear
    # term is a tiny NT dot that directly yields the row layout needed for the
    # final [Bp, Bp] broadcast, so the whole `l_W_phi + v_phi` is one store and
    # no extra XLA kernel launch. ----
    lwphi = jnp.sum(wrow_ref[...] * h, axis=1, keepdims=True)           # [Bp, 1]
    vphi_row = lax.dot_general(vw_ref[...], h, (((1,), (1,)), ((), ())),
                               preferred_element_type=jnp.float32)      # [1, Bp]
    logits_ref[...] = lwphi + vphi_row                                  # [Bp, Bp]


def prepare_params(params, num_labels):
    """One-time preprocessing (hoisted out of the per-call path): concatenate the
    per-direction weights, zero-pad to (8, 128) tiles and cast MXU operands to bf16."""
    D, H = params["wih_f"].shape
    L = num_labels
    HP2 = _round_up(2 * H, 128)

    wih = jnp.zeros((D, HP2), jnp.float32)
    wih = wih.at[:, :H].set(params["wih_f"]).at[:, H:2 * H].set(params["wih_b"])
    bias = jnp.zeros((1, HP2), jnp.float32)
    bias = bias.at[:, :H].set(params["b_f"]).at[:, H:2 * H].set(params["b_b"])
    whh = jnp.zeros((HP2, HP2), jnp.float32)   # block-diagonal fused recurrence weight
    whh = whh.at[:H, :H].set(params["whh_f"]).at[H:2 * H, H:2 * H].set(params["whh_b"])
    wbil = jnp.zeros((L, HP2), jnp.float32)
    wbil = wbil.at[:, :H].set(params["wbil_f"]).at[:, H:2 * H].set(params["wbil_b"])
    vw = jnp.zeros((1, HP2), jnp.float32)
    vw = vw.at[0, :H].set(params["vw_f"][:, 0]).at[0, H:2 * H].set(params["vw_b"][:, 0])

    return dict(hidden_size=H,
                wih=wih.astype(jnp.bfloat16),
                bias=bias,
                whh=whh.astype(jnp.bfloat16),
                wbil=wbil,
                vw=vw)


def discriminator_forward(prep, inputs, seq_len, attr_vector):
    """inputs: [B, T, dec_hidden_size] f32, seq_len: [B] int, attr_vector: [B] int."""
    B, T, D = inputs.shape
    H = prep["hidden_size"]
    HP2 = prep["whh"].shape[0]
    Bp = _round_up(B, 8)

    # Time-major so each recurrence step reads one aligned (8, 128) tile; pad the
    # batch to 8 sublanes (padded rows get seq_len == 0 so their state stays 0)
    # and cast x to bf16 for the MXU.
    x = jnp.transpose(inputs, (1, 0, 2)).astype(jnp.float32)
    x = jnp.pad(x, ((0, 0), (0, Bp - B), (0, 0))).reshape(T * Bp, D)
    x = x.astype(jnp.bfloat16)

    seqlen = jnp.pad(seq_len.astype(jnp.int32), (0, Bp - B)).reshape(Bp, 1)
    # Bilinear one-hot matmul replaced by a row gather: W[0, attr[b], :].
    wrow = jnp.pad(prep["wbil"][attr_vector], ((0, Bp - B), (0, 0)))

    vmem = pl.BlockSpec(memory_space=pltpu.MemorySpace.VMEM)
    kernel = pl.pallas_call(
        functools.partial(_disc_kernel, hidden_size=H),
        out_shape=jax.ShapeDtypeStruct((Bp, Bp), jnp.float32),
        in_specs=[vmem] * 7,
        out_specs=vmem,
        scratch_shapes=[pltpu.VMEM((T * Bp, HP2), jnp.float32)],
    )
    logits = kernel(x, seqlen, wrow, prep["wih"], prep["bias"], prep["whh"], prep["vw"])
    return logits[:B, :B]


def init_params(key, num_labels, dec_hidden_size, hidden_size):
    D, H, L = dec_hidden_size, hidden_size, num_labels
    ks = jax.random.split(key, 10)

    def u(k, shape, scale):
        return jax.random.uniform(k, shape, jnp.float32, -scale, scale)

    s_rnn = float(1.0 / np.sqrt(H))
    params = dict(
        wih_f=u(ks[0], (D, H), s_rnn),
        whh_f=u(ks[1], (H, H), s_rnn),
        b_f=u(ks[2], (1, H), s_rnn) + u(ks[3], (1, H), s_rnn),   # b_ih + b_hh
        wih_b=u(ks[4], (D, H), s_rnn),
        whh_b=u(ks[5], (H, H), s_rnn),
        b_b=u(ks[6], (1, H), s_rnn) + u(ks[7], (1, H), s_rnn),
    )
    wbil = u(ks[8], (L, 2 * H), float(1.0 / np.sqrt(L)))         # nn.Bilinear weight[0]
    vw = u(ks[9], (2 * H, 1), float(1.0 / np.sqrt(2 * H)))       # nn.Linear weight^T
    params.update(wbil_f=wbil[:, :H], wbil_b=wbil[:, H:],
                  vw_f=vw[:H, :], vw_b=vw[H:, :])
    return params


def reference_forward(params, inputs, seq_len, attr_vector, num_labels):
    """Pure-JAX f32 reference reproducing the PyTorch module semantics."""
    B, T, D = inputs.shape
    H = params["whh_f"].shape[0]
    label = jax.nn.one_hot(attr_vector, num_labels, dtype=jnp.float32)
    x = jnp.transpose(inputs, (1, 0, 2)).astype(jnp.float32)

    hf = jnp.zeros((B, H), jnp.float32)
    for t in range(T):
        h_new = jnp.tanh(x[t] @ params["wih_f"] + hf @ params["whh_f"] + params["b_f"])
        m = (t < seq_len).astype(jnp.float32)[:, None]
        hf = m * h_new + (1 - m) * hf

    hb = jnp.zeros((B, H), jnp.float32)
    for t in range(T - 1, -1, -1):
        h_new = jnp.tanh(x[t] @ params["wih_b"] + hb @ params["whh_b"] + params["b_b"])
        m = (t < seq_len).astype(jnp.float32)[:, None]
        hb = m * h_new + (1 - m) * hb

    l_w_phi = jnp.sum((label @ params["wbil_f"]) * hf
                      + (label @ params["wbil_b"]) * hb, axis=1, keepdims=True)  # [B,1]
    v_phi = (hf @ params["vw_f"] + hb @ params["vw_b"])[:, 0]                     # [B]
    return l_w_phi + v_phi[None, :]                                               # [B,B]


if __name__ == "__main__":
    num_labels, dec_hidden_size, hidden_size = 4, 16, 32
    B, T = 2, 8

    key = jax.random.PRNGKey(0)
    kp, kx = jax.random.split(key)
    params = init_params(kp, num_labels, dec_hidden_size, hidden_size)
    prep = prepare_params(params, num_labels)

    inputs = jax.random.normal(kx, (B, T, dec_hidden_size), jnp.float32)
    seq_len = jnp.array([8, 5], jnp.int32)
    attr_vector = jnp.array([1, 3], jnp.int32)

    disc = jax.jit(functools.partial(discriminator_forward, prep))
    logits = jax.block_until_ready(disc(inputs, seq_len, attr_vector))

    ref = reference_forward(params, inputs, seq_len, attr_vector, num_labels)
    assert logits.shape == (B, B)
    # bf16 MXU operands (f32 accumulation) -> widened tolerance vs. the f32 reference.
    np.testing.assert_allclose(np.asarray(logits), np.asarray(ref), atol=2e-2, rtol=2e-2)
    print("KERNEL_OK")
</pallas_src>

<mosaic_0001>
module attributes {stable_mosaic.version = 11 : i64} {
  func.func @_disc_kernel(%arg0: memref<64x16xbf16, #tpu.memory_space<vmem>>, %arg1: memref<8x1xi32, #tpu.memory_space<vmem>>, %arg2: memref<8x128xf32, #tpu.memory_space<vmem>>, %arg3: memref<16x128xbf16, #tpu.memory_space<vmem>>, %arg4: memref<1x128xf32, #tpu.memory_space<vmem>>, %arg5: memref<128x128xbf16, #tpu.memory_space<vmem>>, %arg6: memref<1x128xf32, #tpu.memory_space<vmem>>, %arg7: memref<8x8xf32, #tpu.memory_space<vmem>>, %arg8: memref<64x128xf32, #tpu.memory_space<vmem>>) attributes {dimension_semantics = [], scalar_prefetch = 0 : i64, scratch_operands = 1 : i64, tpu.core_type = #tpu.core_type<tc>} {
    %c0 = arith.constant 0 : index
    %c0_0 = arith.constant 0 : index
    %0 = vector.load %arg0[%c0, %c0_0] : memref<64x16xbf16, #tpu.memory_space<vmem>>, vector<64x16xbf16>
    %c0_1 = arith.constant 0 : index
    %c0_2 = arith.constant 0 : index
    %1 = vector.load %arg3[%c0_1, %c0_2] : memref<16x128xbf16, #tpu.memory_space<vmem>>, vector<16x128xbf16>
    %cst = arith.constant dense<0.000000e+00> : vector<64x128xf32>
    %2 = tpu.matmul %0, %1, %cst {dimension_numbers = #tpu.dot_dimension_numbers<[1], [0], [0], [1], [0, 0, 1, 1], [], []>} : vector<64x16xbf16>, vector<16x128xbf16>, vector<64x128xf32> -> vector<64x128xf32>
    %c0_3 = arith.constant 0 : index
    %c0_4 = arith.constant 0 : index
    %3 = vector.load %arg4[%c0_3, %c0_4] : memref<1x128xf32, #tpu.memory_space<vmem>>, vector<1x128xf32>
    %4 = vector.broadcast %3 : vector<1x128xf32> to vector<64x128xf32>
    %5 = arith.addf %2, %4 : vector<64x128xf32>
    %c0_5 = arith.constant 0 : index
    %c0_6 = arith.constant 0 : index
    %6 = vector.load %arg8[%c0_5, %c0_6] : memref<64x128xf32, #tpu.memory_space<vmem>>, vector<64x128xf32>
    tpu.vector_store %arg8[%c0_5, %c0_6], %5 {strides = array<i32>} : memref<64x128xf32, #tpu.memory_space<vmem>>, vector<64x128xf32>,
    %c0_7 = arith.constant 0 : index
    %c0_8 = arith.constant 0 : index
    %7 = vector.load %arg1[%c0_7, %c0_8] : memref<8x1xi32, #tpu.memory_space<vmem>>, vector<8x1xi32>
    %c0_9 = arith.constant 0 : index
    %c0_10 = arith.constant 0 : index
    %8 = vector.load %arg5[%c0_9, %c0_10] : memref<128x128xbf16, #tpu.memory_space<vmem>>, vector<128x128xbf16>
    %9 = tpu.iota {dimensions = array<i32: 1>} : vector<1x128xi32>
    %c32_i32 = arith.constant 32 : i32
    %10 = vector.broadcast %c32_i32 : i32 to vector<1x128xi32>
    %11 = arith.cmpi slt, %9, %10 : vector<1x128xi32>
    %cst_11 = arith.constant 0.000000e+00 : f32
    %12 = vector.broadcast %cst_11 : f32 to vector<8x128xf32>
    %c0_i32 = arith.constant 0 : i32
    %c7_i32 = arith.constant 7 : i32
    %13 = arith.subi %c7_i32, %c0_i32 : i32
    %c8_i32 = arith.constant 8 : i32
    %14 = arith.muli %c0_i32, %c8_i32 : i32
    %15 = tpu.assume_multiple %14, 8 : i32
    %c8_i32_12 = arith.constant 8 : i32
    %16 = arith.muli %13, %c8_i32_12 : i32
    %17 = tpu.assume_multiple %16, 8 : i32
    %18 = arith.index_cast %15 : i32 to index
    %c0_13 = arith.constant 0 : index
    %19 = vector.load %arg8[%18, %c0_13] : memref<64x128xf32, #tpu.memory_space<vmem>>, vector<8x128xf32>
    %20 = arith.index_cast %17 : i32 to index
    %c0_14 = arith.constant 0 : index
    %21 = vector.load %arg8[%20, %c0_14] : memref<64x128xf32, #tpu.memory_space<vmem>>, vector<8x128xf32>
    %22 = vector.shape_cast %11 : vector<1x128xi1> to vector<1x128xi1>
    %23 = vector.broadcast %22 : vector<1x128xi1> to vector<8x128xi1>
    %24 = arith.select %23, %19, %21 : vector<8x128xi1>, vector<8x128xf32>
    %25 = arith.truncf %12 : vector<8x128xf32> to vector<8x128xbf16>
    %cst_15 = arith.constant dense<0.000000e+00> : vector<8x128xf32>
    %26 = tpu.matmul %25, %8, %cst_15 {dimension_numbers = #tpu.dot_dimension_numbers<[1], [0], [0], [1], [0, 0, 1, 1], [], []>} : vector<8x128xbf16>, vector<128x128xbf16>, vector<8x128xf32> -> vector<8x128xf32>
    %27 = arith.addf %26, %24 : vector<8x128xf32>
    %28 = math.tanh %27 : vector<8x128xf32>
    %29 = vector.broadcast %c0_i32 : i32 to vector<1x128xi32>
    %30 = vector.broadcast %13 : i32 to vector<1x128xi32>
    %31 = arith.select %11, %29, %30 : vector<1x128xi1>, vector<1x128xi32>
    %32 = vector.broadcast %31 : vector<1x128xi32> to vector<8x128xi32>
    %33 = vector.broadcast %7 : vector<8x1xi32> to vector<8x128xi32>
    %34 = arith.cmpi slt, %32, %33 : vector<8x128xi32>
    %35 = arith.select %34, %28, %12 : vector<8x128xi1>, vector<8x128xf32>
    %c1_i32 = arith.constant 1 : i32
    %c7_i32_16 = arith.constant 7 : i32
    %36 = arith.subi %c7_i32_16, %c1_i32 : i32
    %c8_i32_17 = arith.constant 8 : i32
    %37 = arith.muli %c1_i32, %c8_i32_17 : i32
    %38 = tpu.assume_multiple %37, 8 : i32
    %c8_i32_18 = arith.constant 8 : i32
    %39 = arith.muli %36, %c8_i32_18 : i32
    %40 = tpu.assume_multiple %39, 8 : i32
    %41 = arith.index_cast %38 : i32 to index
    %c0_19 = arith.constant 0 : index
    %42 = vector.load %arg8[%41, %c0_19] : memref<64x128xf32, #tpu.memory_space<vmem>>, vector<8x128xf32>
    %43 = arith.index_cast %40 : i32 to index
    %c0_20 = arith.constant 0 : index
    %44 = vector.load %arg8[%43, %c0_20] : memref<64x128xf32, #tpu.memory_space<vmem>>, vector<8x128xf32>
    %45 = vector.shape_cast %11 : vector<1x128xi1> to vector<1x128xi1>
    %46 = vector.broadcast %45 : vector<1x128xi1> to vector<8x128xi1>
    %47 = arith.select %46, %42, %44 : vector<8x128xi1>, vector<8x128xf32>
    %48 = arith.truncf %35 : vector<8x128xf32> to vector<8x128xbf16>
    %cst_21 = arith.constant dense<0.000000e+00> : vector<8x128xf32>
    %49 = tpu.matmul %48, %8, %cst_21 {dimension_numbers = #tpu.dot_dimension_numbers<[1], [0], [0], [1], [0, 0, 1, 1], [], []>} : vector<8x128xbf16>, vector<128x128xbf16>, vector<8x128xf32> -> vector<8x128xf32>
    %50 = arith.addf %49, %47 : vector<8x128xf32>
    %51 = math.tanh %50 : vector<8x128xf32>
    %52 = vector.broadcast %c1_i32 : i32 to vector<1x128xi32>
    %53 = vector.broadcast %36 : i32 to vector<1x128xi32>
    %54 = arith.select %11, %52, %53 : vector<1x128xi1>, vector<1x128xi32>
    %55 = vector.broadcast %54 : vector<1x128xi32> to vector<8x128xi32>
    %56 = vector.broadcast %7 : vector<8x1xi32> to vector<8x128xi32>
    %57 = arith.cmpi slt, %55, %56 : vector<8x128xi32>
    %58 = arith.select %57, %51, %35 : vector<8x128xi1>, vector<8x128xf32>
    %c2_i32 = arith.constant 2 : i32
    %c7_i32_22 = arith.constant 7 : i32
    %59 = arith.subi %c7_i32_22, %c2_i32 : i32
    %c8_i32_23 = arith.constant 8 : i32
    %60 = arith.muli %c2_i32, %c8_i32_23 : i32
    %61 = tpu.assume_multiple %60, 8 : i32
    %c8_i32_24 = arith.constant 8 : i32
    %62 = arith.muli %59, %c8_i32_24 : i32
    %63 = tpu.assume_multiple %62, 8 : i32
    %64 = arith.index_cast %61 : i32 to index
    %c0_25 = arith.constant 0 : index
    %65 = vector.load %arg8[%64, %c0_25] : memref<64x128xf32, #tpu.memory_space<vmem>>, vector<8x128xf32>
    %66 = arith.index_cast %63 : i32 to index
    %c0_26 = arith.constant 0 : index
    %67 = vector.load %arg8[%66, %c0_26] : memref<64x128xf32, #tpu.memory_space<vmem>>, vector<8x128xf32>
    %68 = vector.shape_cast %11 : vector<1x128xi1> to vector<1x128xi1>
    %69 = vector.broadcast %68 : vector<1x128xi1> to vector<8x128xi1>
    %70 = arith.select %69, %65, %67 : vector<8x128xi1>, vector<8x128xf32>
    %71 = arith.truncf %58 : vector<8x128xf32> to vector<8x128xbf16>
    %cst_27 = arith.constant dense<0.000000e+00> : vector<8x128xf32>
    %72 = tpu.matmul %71, %8, %cst_27 {dimension_numbers = #tpu.dot_dimension_numbers<[1], [0], [0], [1], [0, 0, 1, 1], [], []>} : vector<8x128xbf16>, vector<128x128xbf16>, vector<8x128xf32> -> vector<8x128xf32>
    %73 = arith.addf %72, %70 : vector<8x128xf32>
    %74 = math.tanh %73 : vector<8x128xf32>
    %75 = vector.broadcast %c2_i32 : i32 to vector<1x128xi32>
    %76 = vector.broadcast %59 : i32 to vector<1x128xi32>
    %77 = arith.select %11, %75, %76 : vector<1x128xi1>, vector<1x128xi32>
    %78 = vector.broadcast %77 : vector<1x128xi32> to vector<8x128xi32>
    %79 = vector.broadcast %7 : vector<8x1xi32> to vector<8x128xi32>
    %80 = arith.cmpi slt, %78, %79 : vector<8x128xi32>
    %81 = arith.select %80, %74, %58 : vector<8x128xi1>, vector<8x128xf32>
    %c3_i32 = arith.constant 3 : i32
    %c7_i32_28 = arith.constant 7 : i32
    %82 = arith.subi %c7_i32_28, %c3_i32 : i32
    %c8_i32_29 = arith.constant 8 : i32
    %83 = arith.muli %c3_i32, %c8_i32_29 : i32
    %84 = tpu.assume_multiple %83, 8 : i32
    %c8_i32_30 = arith.constant 8 : i32
    %85 = arith.muli %82, %c8_i32_30 : i32
    %86 = tpu.assume_multiple %85, 8 : i32
    %87 = arith.index_cast %84 : i32 to index
    %c0_31 = arith.constant 0 : index
    %88 = vector.load %arg8[%87, %c0_31] : memref<64x128xf32, #tpu.memory_space<vmem>>, vector<8x128xf32>
    %89 = arith.index_cast %86 : i32 to index
    %c0_32 = arith.constant 0 : index
    %90 = vector.load %arg8[%89, %c0_32] : memref<64x128xf32, #tpu.memory_space<vmem>>, vector<8x128xf32>
    %91 = vector.shape_cast %11 : vector<1x128xi1> to vector<1x128xi1>
    %92 = vector.broadcast %91 : vector<1x128xi1> to vector<8x128xi1>
    %93 = arith.select %92, %88, %90 : vector<8x128xi1>, vector<8x128xf32>
    %94 = arith.truncf %81 : vector<8x128xf32> to vector<8x128xbf16>
    %cst_33 = arith.constant dense<0.000000e+00> : vector<8x128xf32>
    %95 = tpu.matmul %94, %8, %cst_33 {dimension_numbers = #tpu.dot_dimension_numbers<[1], [0], [0], [1], [0, 0, 1, 1], [], []>} : vector<8x128xbf16>, vector<128x128xbf16>, vector<8x128xf32> -> vector<8x128xf32>
    %96 = arith.addf %95, %93 : vector<8x128xf32>
    %97 = math.tanh %96 : vector<8x128xf32>
    %98 = vector.broadcast %c3_i32 : i32 to vector<1x128xi32>
    %99 = vector.broadcast %82 : i32 to vector<1x128xi32>
    %100 = arith.select %11, %98, %99 : vector<1x128xi1>, vector<1x128xi32>
    %101 = vector.broadcast %100 : vector<1x128xi32> to vector<8x128xi32>
    %102 = vector.broadcast %7 : vector<8x1xi32> to vector<8x128xi32>
    %103 = arith.cmpi slt, %101, %102 : vector<8x128xi32>
    %104 = arith.select %103, %97, %81 : vector<8x128xi1>, vector<8x128xf32>
    %c4_i32 = arith.constant 4 : i32
    %c7_i32_34 = arith.constant 7 : i32
    %105 = arith.subi %c7_i32_34, %c4_i32 : i32
    %c8_i32_35 = arith.constant 8 : i32
    %106 = arith.muli %c4_i32, %c8_i32_35 : i32
    %107 = tpu.assume_multiple %106, 8 : i32
    %c8_i32_36 = arith.constant 8 : i32
    %108 = arith.muli %105, %c8_i32_36 : i32
    %109 = tpu.assume_multiple %108, 8 : i32
    %110 = arith.index_cast %107 : i32 to index
    %c0_37 = arith.constant 0 : index
    %111 = vector.load %arg8[%110, %c0_37] : memref<64x128xf32, #tpu.memory_space<vmem>>, vector<8x128xf32>
    %112 = arith.index_cast %109 : i32 to index
    %c0_38 = arith.constant 0 : index
    %113 = vector.load %arg8[%112, %c0_38] : memref<64x128xf32, #tpu.memory_space<vmem>>, vector<8x128xf32>
    %114 = vector.shape_cast %11 : vector<1x128xi1> to vector<1x128xi1>
    %115 = vector.broadcast %114 : vector<1x128xi1> to vector<8x128xi1>
    %116 = arith.select %115, %111, %113 : vector<8x128xi1>, vector<8x128xf32>
    %117 = arith.truncf %104 : vector<8x128xf32> to vector<8x128xbf16>
    %cst_39 = arith.constant dense<0.000000e+00> : vector<8x128xf32>
    %118 = tpu.matmul %117, %8, %cst_39 {dimension_numbers = #tpu.dot_dimension_numbers<[1], [0], [0], [1], [0, 0, 1, 1], [], []>} : vector<8x128xbf16>, vector<128x128xbf16>, vector<8x128xf32> -> vector<8x128xf32>
    %119 = arith.addf %118, %116 : vector<8x128xf32>
    %120 = math.tanh %119 : vector<8x128xf32>
    %121 = vector.broadcast %c4_i32 : i32 to vector<1x128xi32>
    %122 = vector.broadcast %105 : i32 to vector<1x128xi32>
    %123 = arith.select %11, %121, %122 : vector<1x128xi1>, vector<1x128xi32>
    %124 = vector.broadcast %123 : vector<1x128xi32> to vector<8x128xi32>
    %125 = vector.broadcast %7 : vector<8x1xi32> to vector<8x128xi32>
    %126 = arith.cmpi slt, %124, %125 : vector<8x128xi32>
    %127 = arith.select %126, %120, %104 : vector<8x128xi1>, vector<8x128xf32>
    %c5_i32 = arith.constant 5 : i32
    %c7_i32_40 = arith.constant 7 : i32
    %128 = arith.subi %c7_i32_40, %c5_i32 : i32
    %c8_i32_41 = arith.constant 8 : i32
    %129 = arith.muli %c5_i32, %c8_i32_41 : i32
    %130 = tpu.assume_multiple %129, 8 : i32
    %c8_i32_42 = arith.constant 8 : i32
    %131 = arith.muli %128, %c8_i32_42 : i32
    %132 = tpu.assume_multiple %131, 8 : i32
    %133 = arith.index_cast %130 : i32 to index
    %c0_43 = arith.constant 0 : index
    %134 = vector.load %arg8[%133, %c0_43] : memref<64x128xf32, #tpu.memory_space<vmem>>, vector<8x128xf32>
    %135 = arith.index_cast %132 : i32 to index
    %c0_44 = arith.constant 0 : index
    %136 = vector.load %arg8[%135, %c0_44] : memref<64x128xf32, #tpu.memory_space<vmem>>, vector<8x128xf32>
    %137 = vector.shape_cast %11 : vector<1x128xi1> to vector<1x128xi1>
    %138 = vector.broadcast %137 : vector<1x128xi1> to vector<8x128xi1>
    %139 = arith.select %138, %134, %136 : vector<8x128xi1>, vector<8x128xf32>
    %140 = arith.truncf %127 : vector<8x128xf32> to vector<8x128xbf16>
    %cst_45 = arith.constant dense<0.000000e+00> : vector<8x128xf32>
    %141 = tpu.matmul %140, %8, %cst_45 {dimension_numbers = #tpu.dot_dimension_numbers<[1], [0], [0], [1], [0, 0, 1, 1], [], []>} : vector<8x128xbf16>, vector<128x128xbf16>, vector<8x128xf32> -> vector<8x128xf32>
    %142 = arith.addf %141, %139 : vector<8x128xf32>
    %143 = math.tanh %142 : vector<8x128xf32>
    %144 = vector.broadcast %c5_i32 : i32 to vector<1x128xi32>
    %145 = vector.broadcast %128 : i32 to vector<1x128xi32>
    %146 = arith.select %11, %144, %145 : vector<1x128xi1>, vector<1x128xi32>
    %147 = vector.broadcast %146 : vector<1x128xi32> to vector<8x128xi32>
    %148 = vector.broadcast %7 : vector<8x1xi32> to vector<8x128xi32>
    %149 = arith.cmpi slt, %147, %148 : vector<8x128xi32>
    %150 = arith.select %149, %143, %127 : vector<8x128xi1>, vector<8x128xf32>
    %c6_i32 = arith.constant 6 : i32
    %c7_i32_46 = arith.constant 7 : i32
    %151 = arith.subi %c7_i32_46, %c6_i32 : i32
    %c8_i32_47 = arith.constant 8 : i32
    %152 = arith.muli %c6_i32, %c8_i32_47 : i32
    %153 = tpu.assume_multiple %152, 8 : i32
    %c8_i32_48 = arith.constant 8 : i32
    %154 = arith.muli %151, %c8_i32_48 : i32
    %155 = tpu.assume_multiple %154, 8 : i32
    %156 = arith.index_cast %153 : i32 to index
    %c0_49 = arith.constant 0 : index
    %157 = vector.load %arg8[%156, %c0_49] : memref<64x128xf32, #tpu.memory_space<vmem>>, vector<8x128xf32>
    %158 = arith.index_cast %155 : i32 to index
    %c0_50 = arith.constant 0 : index
    %159 = vector.load %arg8[%158, %c0_50] : memref<64x128xf32, #tpu.memory_space<vmem>>, vector<8x128xf32>
    %160 = vector.shape_cast %11 : vector<1x128xi1> to vector<1x128xi1>
    %161 = vector.broadcast %160 : vector<1x128xi1> to vector<8x128xi1>
    %162 = arith.select %161, %157, %159 : vector<8x128xi1>, vector<8x128xf32>
    %163 = arith.truncf %150 : vector<8x128xf32> to vector<8x128xbf16>
    %cst_51 = arith.constant dense<0.000000e+00> : vector<8x128xf32>
    %164 = tpu.matmul %163, %8, %cst_51 {dimension_numbers = #tpu.dot_dimension_numbers<[1], [0], [0], [1], [0, 0, 1, 1], [], []>} : vector<8x128xbf16>, vector<128x128xbf16>, vector<8x128xf32> -> vector<8x128xf32>
    %165 = arith.addf %164, %162 : vector<8x128xf32>
    %166 = math.tanh %165 : vector<8x128xf32>
    %167 = vector.broadcast %c6_i32 : i32 to vector<1x128xi32>
    %168 = vector.broadcast %151 : i32 to vector<1x128xi32>
    %169 = arith.select %11, %167, %168 : vector<1x128xi1>, vector<1x128xi32>
    %170 = vector.broadcast %169 : vector<1x128xi32> to vector<8x128xi32>
    %171 = vector.broadcast %7 : vector<8x1xi32> to vector<8x128xi32>
    %172 = arith.cmpi slt, %170, %171 : vector<8x128xi32>
    %173 = arith.select %172, %166, %150 : vector<8x128xi1>, vector<8x128xf32>
    %c7_i32_52 = arith.constant 7 : i32
    %c7_i32_53 = arith.constant 7 : i32
    %174 = arith.subi %c7_i32_53, %c7_i32_52 : i32
    %c8_i32_54 = arith.constant 8 : i32
    %175 = arith.muli %c7_i32_52, %c8_i32_54 : i32
    %176 = tpu.assume_multiple %175, 8 : i32
    %c8_i32_55 = arith.constant 8 : i32
    %177 = arith.muli %174, %c8_i32_55 : i32
    %178 = tpu.assume_multiple %177, 8 : i32
    %179 = arith.index_cast %176 : i32 to index
    %c0_56 = arith.constant 0 : index
    %180 = vector.load %arg8[%179, %c0_56] : memref<64x128xf32, #tpu.memory_space<vmem>>, vector<8x128xf32>
    %181 = arith.index_cast %178 : i32 to index
    %c0_57 = arith.constant 0 : index
    %182 = vector.load %arg8[%181, %c0_57] : memref<64x128xf32, #tpu.memory_space<vmem>>, vector<8x128xf32>
    %183 = vector.shape_cast %11 : vector<1x128xi1> to vector<1x128xi1>
    %184 = vector.broadcast %183 : vector<1x128xi1> to vector<8x128xi1>
    %185 = arith.select %184, %180, %182 : vector<8x128xi1>, vector<8x128xf32>
    %186 = arith.truncf %173 : vector<8x128xf32> to vector<8x128xbf16>
    %cst_58 = arith.constant dense<0.000000e+00> : vector<8x128xf32>
    %187 = tpu.matmul %186, %8, %cst_58 {dimension_numbers = #tpu.dot_dimension_numbers<[1], [0], [0], [1], [0, 0, 1, 1], [], []>} : vector<8x128xbf16>, vector<128x128xbf16>, vector<8x128xf32> -> vector<8x128xf32>
    %188 = arith.addf %187, %185 : vector<8x128xf32>
    %189 = math.tanh %188 : vector<8x128xf32>
    %190 = vector.broadcast %c7_i32_52 : i32 to vector<1x128xi32>
    %191 = vector.broadcast %174 : i32 to vector<1x128xi32>
    %192 = arith.select %11, %190, %191 : vector<1x128xi1>, vector<1x128xi32>
    %193 = vector.broadcast %192 : vector<1x128xi32> to vector<8x128xi32>
    %194 = vector.broadcast %7 : vector<8x1xi32> to vector<8x128xi32>
    %195 = arith.cmpi slt, %193, %194 : vector<8x128xi32>
    %196 = arith.select %195, %189, %173 : vector<8x128xi1>, vector<8x128xf32>
    %c8_i32_59 = arith.constant 8 : i32
    %c0_60 = arith.constant 0 : index
    %c0_61 = arith.constant 0 : index
    %197 = vector.load %arg2[%c0_60, %c0_61] : memref<8x128xf32, #tpu.memory_space<vmem>>, vector<8x128xf32>
    %198 = arith.mulf %197, %196 : vector<8x128xf32>
    %cst_62 = arith.constant dense<0.000000e+00> : vector<8xf32>
    %199 = vector.multi_reduction <add>, %198, %cst_62 [1] : vector<8x128xf32> to vector<8xf32>
    %200 = vector.shape_cast %199 : vector<8xf32> to vector<8x1xf32>
    %c0_63 = arith.constant 0 : index
    %c0_64 = arith.constant 0 : index
    %201 = vector.load %arg6[%c0_63, %c0_64] : memref<1x128xf32, #tpu.memory_space<vmem>>, vector<1x128xf32>
    %cst_65 = arith.constant dense<0.000000e+00> : vector<1x8xf32>
    %202 = tpu.matmul %201, %196, %cst_65 {dimension_numbers = #tpu.dot_dimension_numbers<[1], [1], [0], [0], [0, 0, 1, 0], [], []>} : vector<1x128xf32>, vector<8x128xf32>, vector<1x8xf32> -> vector<1x8xf32>
    %203 = vector.broadcast %200 : vector<8x1xf32> to vector<8x8xf32>
    %204 = vector.broadcast %202 : vector<1x8xf32> to vector<8x8xf32>
    %205 = arith.addf %203, %204 : vector<8x8xf32>
    %c0_66 = arith.constant 0 : index
    %c0_67 = arith.constant 0 : index
    %206 = vector.load %arg7[%c0_66, %c0_67] : memref<8x8xf32, #tpu.memory_space<vmem>>, vector<8x8xf32>
    tpu.vector_store %arg7[%c0_66, %c0_67], %205 {strides = array<i32>} : memref<8x8xf32, #tpu.memory_space<vmem>>, vector<8x8xf32>,
    return
  }
}

</mosaic_0001>

<bundles_post_ra>
// kernel: discriminator_forward.1
= control target key start
LH: loop header
LB: loop body
LE: loop exit
PB: predicated region body
PF: predicated region fallthrough
CT: control target
= control target key end

     0   :  { %v1012_v0 = vmov 0.0   ;;  %vm1013_vm0 = vmmov 0   ;;  %vm70_vm1 = vcmask 130048   ;;  %v1014_v3 = vmov 0   ;;  %s1356_s3 = inlined_call_operand.vmem [shape: bf16[16,128], index: 3, kind: input, shape index: {}]   ;;  %s1357_s5 = inlined_call_operand.vmem [shape: bf16[128,128], index: 5, kind: input, shape index: {}]   ;;  %s1358_s0 = inlined_call_operand.vmem [shape: bf16[64,16], index: 0, kind: input, shape index: {}]   ;;  %s1359_s1 = inlined_call_operand.vmem [shape: s32[8,1], index: 1, kind: input, shape index: {}]   ;;  %s1360_s4 = inlined_call_operand.vmem [shape: f32[1,128], index: 4, kind: input, shape index: {}]   ;;  %s1361_s2 = inlined_call_operand.vmem [shape: f32[8,128], index: 2, kind: input, shape index: {}]   ;;  %s1362_s6 = inlined_call_operand.vmem [shape: f32[1,128], index: 6, kind: input, shape index: {}]   ;;  %s1363_s7 = inlined_call_operand.vmem [shape: f32[8,8], index: 7, kind: output, shape index: {}]  }
   0x1   :  { %807 = vmatprep.subr.bf16.mxu1 %v1012_v0  ;;  %v983_v1 = vld [vmem:[%s1356_s3] sm:$0xff]   ;;  %823 = vmatprep.mubr.msk.bf16.mxu1 %vm1013_vm0, %v1012_v0  ;;  %v1071_v2 = vld [vmem:[%s1357_s5 + $0x38] sm:$0xff]   ;;  %v986_v5 = vld [vmem:[%s1358_s0 + $0x8] sm:$0xff]   ;;  %v173_v17 = vlaneseq  ;;  %v1015_v49 = vmov 7   ;;  %v1016_v58 = vmov 6   ;;  %vm691_vm12 = vcmask 64512  }
   0x2   :  { %982 = vset.pattern.permute.xlu0 %v1014_v3  ;;  %797 = vmatprep.subr.bf16.mxu0 %v983_v1  ;;  %v985_v4 = vld [vmem:[%s1358_s0] sm:$0xff]   ;;  %v1086_v6 = vld [vmem:[%s1357_s5 + $0x30] sm:$0xff]   ;;  %v1097_v8 = vld [vmem:[%s1357_s5 + $0x28] sm:$0xff]  }
   0x3   :  { %808 = vmatpush3.bf16.msra.mxu1 %v1071_v2  ;;  %798 = vmatpush3.bf16.msra.mxu0 %v983_v1  ;;  %v989_v7 = vld [vmem:[%s1358_s0 + $0x10] sm:$0xff]   ;;  %v990_v9 = vld [vmem:[%s1358_s0 + $0x18] sm:$0xff]   ;;  %v1110_v10 = vld [vmem:[%s1357_s5 + $0x20] sm:$0xff]   ;;  %v1186_v21 = vand.u32 127, %v173_v17 }
   0x4   :  { %799 = vmatprep.mubr.msk.bf16.mxu0 %vm70_vm1, %v985_v4  ;;  %809 = vmatprep.subr.bf16.mxu1 %v1012_v0  ;;  %v156_v11 = vld [vmem:[%s1359_s1] sm:$0xff]  ;;  %v1123_v12 = vld [vmem:[%s1357_s5 + $0x18] sm:$0xff]   ;;  %v1134_v13 = vld [vmem:[%s1357_s5 + $0x10] sm:$0xff]  }
   0x5   :  { %827 = vmatprep.subr.bf16.mxu0 %v1012_v0  ;;  %273 = vperm.xlu0 %982, %v156_v11   ;;  %v1143_v14 = vld [vmem:[%s1357_s5 + $0x8] sm:$0xff]   ;;  %v1152_v15 = vld [vmem:[%s1357_s5] sm:$0xff]   ;;  %vm175_vm2 = vcmp.lt.s32.totalorder %v1186_v21, 32  ;;  %v1017_v11 = vmov 5  }
   0x6   :  { %800 = vmatmul.mubr.msk.bf16.vlgmr.msra.gmra.mxu0 %vm70_vm1, %v986_v5  ;;  %v697_v16 = vld [vmem:[%s1360_s4] ss:$0 sm:$0xff]  ;;  %v271_v50 = vsel %vm175_vm2, 0, %v1015_v49  ;;  %v324_v59 = vsel %vm175_vm2, 1, %v1016_v58 }
   0x7   :  { %810 = vmatpush3.bf16.msra.mxu1 %v1086_v6  ;;  %828 = vmatpush3.bf16.msra.mxu0 %v1071_v2 }
   0x8   :  { %811 = vmatprep.subr.bf16.mxu1 %v1012_v0  ;;  %803 = vmatprep.mubr.msk.bf16.mxu0 %vm70_vm1, %v989_v7 }
   0x9   :  { %829 = vmatprep.subr.bf16.mxu0 %v1012_v0 }
   0xb   :  { %812 = vmatpush3.bf16.msra.mxu1 %v1097_v8  ;;  %830 = vmatpush3.bf16.msra.mxu0 %v1086_v6 }
   0xc   :  { %813 = vmatprep.subr.bf16.mxu1 %v1012_v0  ;;  %831 = vmatprep.subr.bf16.mxu0 %v1012_v0 }
   0xe   :  { %804 = vmatmul.mubr.msk.bf16.gmra.mxu0 %vm70_vm1, %v990_v9 }
   0xf   :  { %814 = vmatpush3.bf16.msra.mxu1 %v1110_v10  ;;  %832 = vmatpush3.bf16.msra.mxu0 %v1097_v8 }
  0x10   :  { %815 = vmatprep.subr.bf16.mxu1 %v1012_v0  ;;  %833 = vmatprep.subr.bf16.mxu0 %v1012_v0 }
  0x11   :  { %843 = vmatprep.mubr.msk.bf16.mxu0 %vm1013_vm0, %v1012_v0 }
  0x13   :  { %816 = vmatpush3.bf16.msra.mxu1 %v1123_v12  ;;  %834 = vmatpush3.bf16.msra.mxu0 %v1110_v10 }
  0x14   :  { %817 = vmatprep.subr.bf16.mxu1 %v1012_v0  ;;  %835 = vmatprep.subr.bf16.mxu0 %v1012_v0 }
  0x17   :  { %818 = vmatpush3.bf16.msra.mxu1 %v1134_v13  ;;  %836 = vmatpush3.bf16.msra.mxu0 %v1123_v12 }
  0x18   :  { %819 = vmatprep.subr.bf16.mxu1 %v1012_v0  ;;  %837 = vmatprep.subr.bf16.mxu0 %v1012_v0 }
  0x1b   :  { %820 = vmatpush3.bf16.msra.mxu1 %v1143_v14  ;;  %838 = vmatpush3.bf16.msra.mxu0 %v1134_v13 }
  0x1c   :  { %821 = vmatprep.subr.bf16.mxu1 %v1012_v0  ;;  %839 = vmatprep.subr.bf16.mxu0 %v1012_v0 }
  0x1f   :  { %822 = vmatpush3.bf16.msra.mxu1 %v1152_v15  ;;  %840 = vmatpush3.bf16.msra.mxu0 %v1143_v14 }
  0x20   :  { %841 = vmatprep.subr.bf16.mxu0 %v1012_v0  ;;  %847 = vmatprep.subr.bf16.mxu1 %v1012_v0 }
  0x22   :  { %824 = vmatmul.mubr.bf16.vlgmr.msra.gmra.mxu1 %v1014_v3 }
  0x23   :  { %842 = vmatpush3.bf16.msra.mxu0 %v1152_v15  ;;  %848 = vmatpush3.bf16.msra.mxu1 %v1071_v2 }
  0x24   :  { %849 = vmatprep.subr.bf16.mxu1 %v1012_v0  ;;  %863 = vmatprep.mubr.msk.bf16.mxu1 %vm1013_vm0, %v1012_v0 }
  0x25   :  { %867 = vmatprep.subr.bf16.mxu0 %v1012_v0 }
  0x27   :  { %850 = vmatpush3.bf16.msra.mxu1 %v1086_v6 }
  0x28   :  { %851 = vmatprep.subr.bf16.mxu1 %v1012_v0 }
  0x2b   :  { %852 = vmatpush3.bf16.msra.mxu1 %v1097_v8 }
  0x2c   :  { %853 = vmatprep.subr.bf16.mxu1 %v1012_v0 }
  0x2f   :  { %854 = vmatpush3.bf16.msra.mxu1 %v1110_v10 }
  0x30   :  { %855 = vmatprep.subr.bf16.mxu1 %v1012_v0 }
  0x33   :  { %856 = vmatpush3.bf16.msra.mxu1 %v1123_v12 }
  0x34   :  { %857 = vmatprep.subr.bf16.mxu1 %v1012_v0 }
  0x37   :  { %858 = vmatpush3.bf16.msra.mxu1 %v1134_v13 }
  0x38   :  { %859 = vmatprep.subr.bf16.mxu1 %v1012_v0 }
  0x3b   :  { %860 = vmatpush3.bf16.msra.mxu1 %v1143_v14 }
  0x3c   :  { %861 = vmatprep.subr.bf16.mxu1 %v1012_v0 }
  0x3f   :  { %862 = vmatpush3.bf16.msra.mxu1 %v1152_v15 }
  0x40   :  { %887 = vmatprep.subr.bf16.mxu1 %v1012_v0 }
  0x80   :  { %v1217_v48 = vpop.permute.xlu0 %273 }
  0x81   :  { %vm275_vm3 = vcmp.lt.s32.totalorder %v271_v50, %v1217_v48  ;;  %vm325_vm5 = vcmp.lt.s32.totalorder %v324_v59, %v1217_v48 }
  0x82   :  { %vm715_vm4 = vmpackc.low %vm275_vm3, %vm275_vm3 }
  0xc6   :  { %v801_v18 = vpop.f32.mrf.mxu0 }
  0xc7   :  { %v126_v19 = vadd.f32 %v801_v18, %v697_v16 }
  0xc8   :  { %v117_v20 = vpop.f32.mrf.mxu0 }
  0xc9   :  { %v118_v29 = vadd.f32 %v697_v16, %v117_v20 }
  0xca   :  { %v802_v22 = vpop.f32.mrf.mxu0 }
  0xcb   :  { %v129_v23 = vadd.f32 %v802_v22, %v697_v16 }
  0xcc   :  { %v120_v24 = vpop.f32.mrf.mxu0 }
  0xcd   :  { %v121_v25 = vadd.f32 %v697_v16, %v120_v24 }
  0xce   :  { %v805_v26 = vpop.f32.mrf.mxu0 }
  0xcf   :  { %v142_v27 = vadd.f32 %v805_v26, %v697_v16 }
  0xd0   :  { %v133_v28 = vpop.f32.mrf.mxu0 }
  0xd1   :  { %v134_v30 = vadd.f32 %v697_v16, %v133_v28  ;;  %v281_v31 = vsel %vm175_vm2, %v121_v25, %v142_v27  ;;  %v1193_v32 = vsel %vm175_vm2, %v142_v27, %v121_v25  ;;  %v1018_v27 = vmov 4  }
  0xd2   :  { %v806_v33 = vpop.f32.mrf.mxu0  ;;  %v424_v28 = vsel %vm175_vm2, 3, %v1018_v27 }
  0xd3   :  { %v145_v34 = vadd.f32 %v806_v33, %v697_v16  ;;  %v1197_v35 = vsel %vm175_vm2, %v129_v23, %v134_v30  ;;  %v1201_v36 = vsel %vm175_vm2, %v134_v30, %v129_v23  ;;  %vm425_vm7 = vcmp.lt.s32.totalorder %v424_v28, %v1217_v48 }
  0xd4   :  { %v136_v37 = vpop.f32.mrf.mxu0 }
  0xd5   :  { %v137_v38 = vadd.f32 %v697_v16, %v136_v37  ;;  %v1205_v39 = vsel %vm175_vm2, %v145_v34, %v118_v29  ;;  %v181_v42 = vsel %vm175_vm2, %v118_v29, %v145_v34  ;;  %v374_v16 = vsel %vm175_vm2, 2, %v1017_v11 }
  0xd6   :  { %vm375_vm6 = vcmp.lt.s32.totalorder %v374_v16, %v1217_v48 }
  0xd7   :  { %v1209_v40 = vsel %vm175_vm2, %v126_v19, %v137_v38  ;;  %v1213_v41 = vsel %vm175_vm2, %v137_v38, %v126_v19 }
  0xe2   :  { %v264_v43 = vpop.f32.mrf.mxu1 }
  0xe3   :  { %v265_v44 = vadd.f32 %v264_v43, %v181_v42 }
  0xe4   :  { %v825_v45 = vpop.f32.mrf.mxu1 }
  0xe5   :  { %996 = vtanh.f32 %v265_v44 }
  0xe6   :  { %v267_v46 = vpop.f32.mrf.mxu1 }
  0xe8   :  { %v826_v47 = vpop.f32.mrf.mxu1 }
  0xf2   :  { %v997_v51 = vpop.eup %996 }
  0xf3   :  { %v716_v52 = vpack.c.bf16 %v997_v51, %v997_v51  ;;  %v276_v61 = vsel %vm275_vm3, %v997_v51, 0.0 }
  0xf5   :  { %844 = vmatmul.mubr.msk.bf16.vlgmr.msra.gmra.mxu0 %vm715_vm4, %v716_v52  ;;  %v1021_v52 = vmov 1  }
  0xf6   :  { %868 = vmatpush3.bf16.msra.mxu0 %v1071_v2  ;;  %883 = vmatprep.mubr.msk.bf16.mxu0 %vm1013_vm0, %v1012_v0 }
  0xf7   :  { %869 = vmatprep.subr.bf16.mxu0 %v1012_v0 }
  0xfa   :  { %870 = vmatpush3.bf16.msra.mxu0 %v1086_v6 }
  0xfb   :  { %871 = vmatprep.subr.bf16.mxu0 %v1012_v0 }
  0xfe   :  { %872 = vmatpush3.bf16.msra.mxu0 %v1097_v8 }
  0xff   :  { %873 = vmatprep.subr.bf16.mxu0 %v1012_v0 }
 0x102   :  { %874 = vmatpush3.bf16.msra.mxu0 %v1110_v10 }
 0x103   :  { %875 = vmatprep.subr.bf16.mxu0 %v1012_v0 }
 0x106   :  { %876 = vmatpush3.bf16.msra.mxu0 %v1123_v12 }
 0x107   :  { %877 = vmatprep.subr.bf16.mxu0 %v1012_v0 }
 0x10a   :  { %878 = vmatpush3.bf16.msra.mxu0 %v1134_v13 }
 0x10b   :  { %879 = vmatprep.subr.bf16.mxu0 %v1012_v0 }
 0x10e   :  { %880 = vmatpush3.bf16.msra.mxu0 %v1143_v14 }
 0x10f   :  { %881 = vmatprep.subr.bf16.mxu0 %v1012_v0 }
 0x112   :  { %882 = vmatpush3.bf16.msra.mxu0 %v1152_v15 }
 0x113   :  { %907 = vmatprep.subr.bf16.mxu0 %v1012_v0 }
 0x1b5   :  { %v317_v53 = vpop.f32.mrf.mxu0 }
 0x1b6   :  { %v318_v54 = vadd.f32 %v317_v53, %v281_v31  ;;  %v562_v53 = vsel %vm175_vm2, 6, %v1021_v52 }
 0x1b7   :  { %v845_v55 = vpop.f32.mrf.mxu0  ;;  %vm563_vm10 = vcmp.lt.s32.totalorder %v562_v53, %v1217_v48 }
 0x1b8   :  { %998 = vtanh.f32 %v318_v54 }
 0x1b9   :  { %v320_v56 = vpop.f32.mrf.mxu0 }
 0x1bb   :  { %v846_v57 = vpop.f32.mrf.mxu0 }
 0x1c5   :  { %v999_v60 = vpop.eup %998 }
 0x1c6   :  { %v326_v62 = vsel %vm325_vm5, %v999_v60, %v276_v61  ;;  %v608_v60 = vsel %vm175_vm2, 7, %v1014_v3  ;;  %v611_v61 = vld [vmem:[%s1361_s2] sm:$0xff] }
 0x1c7   :  { %v332_v63 = vpack.c.bf16 %v326_v62, %v326_v62  ;;  %vm609_vm11 = vcmp.lt.s32.totalorder %v608_v60, %v1217_v48 }
 0x1c9   :  { %864 = vmatmul.mubr.bf16.vlgmr.msra.gmra.mxu1 %v332_v63 }
 0x1ca   :  { %888 = vmatpush3.bf16.msra.mxu1 %v1071_v2  ;;  %903 = vmatprep.mubr.msk.bf16.mxu1 %vm1013_vm0, %v1012_v0 }
 0x1cb   :  { %889 = vmatprep.subr.bf16.mxu1 %v1012_v0 }
 0x1ce   :  { %890 = vmatpush3.bf16.msra.mxu1 %v1086_v6 }
 0x1cf   :  { %891 = vmatprep.subr.bf16.mxu1 %v1012_v0 }
 0x1d2   :  { %892 = vmatpush3.bf16.msra.mxu1 %v1097_v8 }
 0x1d3   :  { %893 = vmatprep.subr.bf16.mxu1 %v1012_v0 }
 0x1d6   :  { %894 = vmatpush3.bf16.msra.mxu1 %v1110_v10 }
 0x1d7   :  { %895 = vmatprep.subr.bf16.mxu1 %v1012_v0 }
 0x1da   :  { %896 = vmatpush3.bf16.msra.mxu1 %v1123_v12 }
 0x1db   :  { %897 = vmatprep.subr.bf16.mxu1 %v1012_v0 }
 0x1de   :  { %898 = vmatpush3.bf16.msra.mxu1 %v1134_v13 }
 0x1df   :  { %899 = vmatprep.subr.bf16.mxu1 %v1012_v0 }
 0x1e2   :  { %900 = vmatpush3.bf16.msra.mxu1 %v1143_v14 }
 0x1e3   :  { %901 = vmatprep.subr.bf16.mxu1 %v1012_v0 }
 0x1e6   :  { %902 = vmatpush3.bf16.msra.mxu1 %v1152_v15 }
 0x1e7   :  { %927 = vmatprep.subr.bf16.mxu1 %v1012_v0 }
 0x289   :  { %v367_v1 = vpop.f32.mrf.mxu1 }
 0x28a   :  { %v368_v4 = vadd.f32 %v367_v1, %v1209_v40  ;;  %v1019_v40 = vmov 3  }
 0x28b   :  { %v865_v5 = vpop.f32.mrf.mxu1  ;;  %v470_v42 = vsel %vm175_vm2, 4, %v1019_v40 }
 0x28c   :  { %1000 = vtanh.f32 %v368_v4  ;;  %vm471_vm8 = vcmp.lt.s32.totalorder %v470_v42, %v1217_v48  ;;  %v687_v4 = vshrl.u32 %v173_v17, 7 }
 0x28d   :  { %v370_v7 = vpop.f32.mrf.mxu1 }
 0x28e   :  { %v688_v21 = vsub.s32 0, %v687_v4 }
 0x28f   :  { %v866_v9 = vpop.f32.mrf.mxu1 }
 0x299   :  { %v1001_v18 = vpop.eup %1000 }
 0x29a   :  { %v376_v19 = vsel %vm375_vm6, %v1001_v18, %v326_v62 }
 0x29b   :  { %v382_v20 = vpack.c.bf16 %v376_v19, %v376_v19 }
 0x29d   :  { %884 = vmatmul.mubr.bf16.vlgmr.msra.gmra.mxu0 %v382_v20 }
 0x29e   :  { %908 = vmatpush3.bf16.msra.mxu0 %v1071_v2  ;;  %923 = vmatprep.mubr.msk.bf16.mxu0 %vm1013_vm0, %v1012_v0 }
 0x29f   :  { %909 = vmatprep.subr.bf16.mxu0 %v1012_v0 }
 0x2a2   :  { %910 = vmatpush3.bf16.msra.mxu0 %v1086_v6 }
 0x2a3   :  { %911 = vmatprep.subr.bf16.mxu0 %v1012_v0 }
 0x2a6   :  { %912 = vmatpush3.bf16.msra.mxu0 %v1097_v8 }
 0x2a7   :  { %913 = vmatprep.subr.bf16.mxu0 %v1012_v0 }
 0x2aa   :  { %914 = vmatpush3.bf16.msra.mxu0 %v1110_v10 }
 0x2ab   :  { %915 = vmatprep.subr.bf16.mxu0 %v1012_v0 }
 0x2ae   :  { %916 = vmatpush3.bf16.msra.mxu0 %v1123_v12 }
 0x2af   :  { %917 = vmatprep.subr.bf16.mxu0 %v1012_v0 }
 0x2b2   :  { %918 = vmatpush3.bf16.msra.mxu0 %v1134_v13 }
 0x2b3   :  { %919 = vmatprep.subr.bf16.mxu0 %v1012_v0 }
 0x2b6   :  { %920 = vmatpush3.bf16.msra.mxu0 %v1143_v14 }
 0x2b7   :  { %921 = vmatprep.subr.bf16.mxu0 %v1012_v0 }
 0x2ba   :  { %922 = vmatpush3.bf16.msra.mxu0 %v1152_v15 }
 0x2bb   :  { %947 = vmatprep.subr.bf16.mxu0 %v1012_v0 }
 0x35d   :  { %v417_v22 = vpop.f32.mrf.mxu0 }
 0x35e   :  { %v418_v23 = vadd.f32 %v417_v22, %v1197_v35 }
 0x35f   :  { %v885_v24 = vpop.f32.mrf.mxu0 }
 0x360   :  { %1002 = vtanh.f32 %v418_v23 }
 0x361   :  { %v420_v25 = vpop.f32.mrf.mxu0 }
 0x363   :  { %v886_v26 = vpop.f32.mrf.mxu0 }
 0x36d   :  { %v1003_v29 = vpop.eup %1002 }
 0x36e   :  { %v426_v30 = vsel %vm425_vm7, %v1003_v29, %v376_v19 }
 0x36f   :  { %v428_v31 = vpack.c.bf16 %v426_v30, %v426_v30 }
 0x371   :  { %904 = vmatmul.mubr.bf16.vlgmr.msra.gmra.mxu1 %v428_v31 }
 0x372   :  { %928 = vmatpush3.bf16.msra.mxu1 %v1071_v2  ;;  %943 = vmatprep.mubr.msk.bf16.mxu1 %vm1013_vm0, %v1012_v0 }
 0x373   :  { %929 = vmatprep.subr.bf16.mxu1 %v1012_v0 }
 0x376   :  { %930 = vmatpush3.bf16.msra.mxu1 %v1086_v6 }
 0x377   :  { %931 = vmatprep.subr.bf16.mxu1 %v1012_v0 }
 0x37a   :  { %932 = vmatpush3.bf16.msra.mxu1 %v1097_v8 }
 0x37b   :  { %933 = vmatprep.subr.bf16.mxu1 %v1012_v0 }
 0x37e   :  { %934 = vmatpush3.bf16.msra.mxu1 %v1110_v10 }
 0x37f   :  { %935 = vmatprep.subr.bf16.mxu1 %v1012_v0 }
 0x382   :  { %936 = vmatpush3.bf16.msra.mxu1 %v1123_v12 }
 0x383   :  { %937 = vmatprep.subr.bf16.mxu1 %v1012_v0 }
 0x386   :  { %938 = vmatpush3.bf16.msra.mxu1 %v1134_v13 }
 0x387   :  { %939 = vmatprep.subr.bf16.mxu1 %v1012_v0 }
 0x38a   :  { %940 = vmatpush3.bf16.msra.mxu1 %v1143_v14 }
 0x38b   :  { %941 = vmatprep.subr.bf16.mxu1 %v1012_v0 }
 0x38e   :  { %942 = vmatpush3.bf16.msra.mxu1 %v1152_v15 }
 0x38f   :  { %967 = vmatprep.subr.mxu1 %v1012_v0 }
 0x431   :  { %v463_v33 = vpop.f32.mrf.mxu1 }
 0x432   :  { %v464_v34 = vadd.f32 %v463_v33, %v1201_v36 }
 0x433   :  { %v905_v35 = vpop.f32.mrf.mxu1 }
 0x434   :  { %1004 = vtanh.f32 %v464_v34 }
 0x435   :  { %v466_v37 = vpop.f32.mrf.mxu1 }
 0x437   :  { %v906_v38 = vpop.f32.mrf.mxu1 }
 0x441   :  { %v1005_v43 = vpop.eup %1004 }
 0x442   :  { %v472_v44 = vsel %vm471_vm8, %v1005_v43, %v426_v30 }
 0x443   :  { %v474_v45 = vpack.c.bf16 %v472_v44, %v472_v44 }
 0x445   :  { %924 = vmatmul.mubr.bf16.vlgmr.msra.gmra.mxu0 %v474_v45 }
 0x446   :  { %948 = vmatpush3.bf16.msra.mxu0 %v1071_v2  ;;  %963 = vmatprep.mubr.msk.bf16.mxu0 %vm1013_vm0, %v1012_v0 }
 0x447   :  { %949 = vmatprep.subr.bf16.mxu0 %v1012_v0 }
 0x44a   :  { %950 = vmatpush3.bf16.msra.mxu0 %v1086_v6 }
 0x44b   :  { %951 = vmatprep.subr.bf16.mxu0 %v1012_v0 }
 0x44e   :  { %952 = vmatpush3.bf16.msra.mxu0 %v1097_v8 }
 0x44f   :  { %953 = vmatprep.subr.bf16.mxu0 %v1012_v0 }
 0x452   :  { %954 = vmatpush3.bf16.msra.mxu0 %v1110_v10 }
 0x453   :  { %955 = vmatprep.subr.bf16.mxu0 %v1012_v0 }
 0x456   :  { %956 = vmatpush3.bf16.msra.mxu0 %v1123_v12  ;;  %v1020_v12 = vmov 2  }
 0x457   :  { %957 = vmatprep.subr.bf16.mxu0 %v1012_v0  ;;  %v516_v46 = vsel %vm175_vm2, 5, %v1020_v12 }
 0x458   :  { %vm517_vm9 = vcmp.lt.s32.totalorder %v516_v46, %v1217_v48 }
 0x45a   :  { %958 = vmatpush3.bf16.msra.mxu0 %v1134_v13 }
 0x45b   :  { %959 = vmatprep.subr.bf16.mxu0 %v1012_v0 }
 0x45e   :  { %960 = vmatpush3.bf16.msra.mxu0 %v1143_v14 }
 0x45f   :  { %961 = vmatprep.subr.bf16.mxu0 %v1012_v0 }
 0x462   :  { %962 = vmatpush3.bf16.msra.mxu0 %v1152_v15 }
 0x505   :  { %v509_v2 = vpop.f32.mrf.mxu0 }
 0x506   :  { %v510_v6 = vadd.f32 %v509_v2, %v1213_v41 }
 0x507   :  { %v925_v8 = vpop.f32.mrf.mxu0 }
 0x508   :  { %1006 = vtanh.f32 %v510_v6 }
 0x509   :  { %v512_v10 = vpop.f32.mrf.mxu0 }
 0x50b   :  { %v926_v36 = vpop.f32.mrf.mxu0 }
 0x515   :  { %v1007_v13 = vpop.eup %1006 }
 0x516   :  { %v518_v47 = vsel %vm517_vm9, %v1007_v13, %v472_v44 }
 0x517   :  { %v520_v14 = vpack.c.bf16 %v518_v47, %v518_v47 }
 0x519   :  { %944 = vmatmul.mubr.bf16.vlgmr.msra.gmra.mxu1 %v520_v14 }
 0x51a   :  { %969 = vmatprep.mubr.msk.f32.mxu1 %vm1013_vm0, %v1012_v0 }
 0x5d9   :  { %v555_v15 = vpop.f32.mrf.mxu1 }
 0x5da   :  { %v556_v41 = vadd.f32 %v555_v15, %v1193_v32 }
 0x5db   :  { %v945_v49 = vpop.f32.mrf.mxu1 }
 0x5dc   :  { %1008 = vtanh.f32 %v556_v41 }
 0x5dd   :  { %v558_v50 = vpop.f32.mrf.mxu1 }
 0x5df   :  { %v946_v51 = vpop.f32.mrf.mxu1 }
 0x5e9   :  { %v1009_v54 = vpop.eup %1008 }
 0x5ea   :  { %v564_v55 = vsel %vm563_vm10, %v1009_v54, %v518_v47 }
 0x5eb   :  { %v566_v56 = vpack.c.bf16 %v564_v55, %v564_v55 }
 0x5ed   :  { %964 = vmatmul.mubr.bf16.vlgmr.msra.gmra.mxu0 %v566_v56 }
 0x6ad   :  { %v601_v57 = vpop.f32.mrf.mxu0 }
 0x6ae   :  { %v602_v0 = vadd.f32 %v601_v57, %v1205_v39  ;;  %v615_v39 = vld [vmem:[%s1362_s6] sm:$0x1] }
 0x6af   :  { %v965_v58 = vpop.f32.mrf.mxu0 }
 0x6b0   :  { %1010 = vtanh.f32 %v602_v0 }
 0x6b1   :  { %v604_v32 = vpop.f32.mrf.mxu0 }
 0x6b3   :  { %v966_v59 = vpop.f32.mrf.mxu0 }
 0x6bd   :  { %v1011_v62 = vpop.eup %1010 }
 0x6be   :  { %v610_v63 = vsel %vm609_vm11, %v1011_v62, %v564_v55 }
 0x6bf   :  { %968 = vmatpush3.xpose.msra.mxu1 %v610_v63  ;;  %v612_v1 = vmul.f32 %v611_v61, %v610_v63 }
 0x6c1   :  { %613 = vadd.xlane.f32.xlu0 %v612_v1 }
 0x6c2   :  { %970 = vmatmul.mubr.f32.vlgmr.msra.gmra.mxu1 %v615_v39 }
 0x74a   :  { %v614_v7 = vpop.xlane.xlu0 %613 }
 0x782   :  { %v682_v3 = vpop.f32.mrf.mxu1 }
 0x783   :  { %v689_v5 = vrot.slane %v682_v3, %v688_v21 }
 0x784   :  { %v971_v9 = vpop.f32.mrf.mxu1 }
 0x785   :  { %v690_v11 = vadd.f32 %v689_v5, %v614_v7 }
 0x787   :  { %692 = vst.msk [vmem:[%s1363_s7] sm:$0xff] %vm691_vm12, %v690_v11 }

</bundles_post_ra>
